<compile_context>
chip_gen: v5e
topology: v5e:2x2
jax: 0.10.0
libtpu: 0.0.40
codegen_flags: <defaults>
</compile_context>

<pallas_src>
import functools

import jax
import jax.numpy as jnp
from jax.experimental import pallas as pl
from jax.experimental.pallas import tpu as pltpu

_LANE = 128
_MAX_COLS = 8192  # cap on the trailing (lane) dim of the 2D view for ragged sizes


def _hardshrink_kernel(x_ref, o_ref, *, lambd):
    x = x_ref[...]
    # Exact torch semantics: zero where -lambd <= x <= lambd, keep x otherwise
    # (NaNs fall through to the "keep x" branch, matching torch.where).
    zero_region = (x >= -lambd) & (x <= lambd)
    o_ref[...] = jnp.where(zero_region, jnp.zeros_like(x), x)


def _round_up(a, b):
    return pl.cdiv(a, b) * b


def _choose_block_rows(rows_total, rows_hint, sublane, row_bytes, split_bytes):
    """Sublane-aligned row-block size.

    Small arrays -> one full-extent block (per-step overhead dominates).
    Arrays >= split_bytes -> at least 2 (even) near-equal grid steps so both
    v7x TensorCores get work; block never exceeds the (rounded) rows_hint,
    which bounds per-block VMEM.
    """
    hint = max(sublane, (rows_hint // sublane) * sublane)
    total_bytes = rows_total * row_bytes
    if rows_total <= hint:
        if total_bytes >= split_bytes and rows_total >= 2 * sublane:
            return _round_up(pl.cdiv(rows_total, 2), sublane)
        return rows_total  # full-extent single block: always a legal block shape
    grid_n = pl.cdiv(rows_total, hint)
    if total_bytes >= split_bytes and grid_n % 2 == 1:
        grid_n += 1  # even grid -> balanced across the two v7x TensorCores
    return _round_up(pl.cdiv(rows_total, grid_n), sublane)


def _hardshrink_2d(x2d, lambd, rows_hint, split_bytes):
    rows, cols = x2d.shape
    dtype = x2d.dtype
    itemsize = jnp.dtype(dtype).itemsize
    sublane = max(8, 32 // itemsize)  # f32: 8, bf16/f16: 16, int8/fp8: 32
    block_rows = _choose_block_rows(rows, rows_hint, sublane, cols * itemsize, split_bytes)
    grid = (pl.cdiv(rows, block_rows),)
    n = rows * cols
    return pl.pallas_call(
        functools.partial(_hardshrink_kernel, lambd=lambd),
        out_shape=jax.ShapeDtypeStruct((rows, cols), dtype),
        grid_spec=pltpu.PrefetchScalarGridSpec(
            num_scalar_prefetch=0,
            grid=grid,
            in_specs=[pl.BlockSpec((block_rows, cols), lambda i: (i, 0))],
            out_specs=pl.BlockSpec((block_rows, cols), lambda i: (i, 0)),
        ),
        compiler_params=pltpu.CompilerParams(
            dimension_semantics=("parallel",)),
        cost_estimate=pl.CostEstimate(
            flops=3 * n, transcendentals=0, bytes_accessed=2 * n * itemsize),
    )(x2d)


def _largest_divisor_leq(n, limit):
    for c in range(min(limit, n), 0, -1):
        if n % c == 0:
            return c
    return 1


def hardshrink(x, lambd=0.5, *, tile_rows=4096, split_bytes=1 << 20):
    """HardShrink forward, matching torch semantics.

    tile_rows=4096 -> 2 MiB f32 blocks (double-buffered in+out = 8 MiB VMEM),
    comfortably under v5e's 16 MiB scoped-VMEM default while amortizing the
    ~0.35 us per-grid-step overhead on v6e/v7x.
    """
    orig_shape = x.shape
    n = x.size
    if n == 0:
        return x
    flat = x.reshape(-1)  # free (bitcast) view of a contiguous array

    if n % _LANE == 0:
        # Hot path: lane-dense (rows, 128) view, zero host-side copies.
        out = _hardshrink_2d(flat.reshape(-1, _LANE), lambd, tile_rows, split_bytes)
        return out.reshape(orig_shape)

    # Ragged size: pick a free 2D view (R, C) with C = largest divisor of n
    # (<= _MAX_COLS) so the kernel still streams exactly 1 read + 1 write of
    # the data (no pad, no slice, no concat).  C != multiple of 128 only costs
    # masked lanes in VMEM, not HBM traffic.
    cols = _largest_divisor_leq(n, _MAX_COLS)
    if cols >= _LANE or cols == n:
        rows_hint = max(1, tile_rows * _LANE // _round_up(cols, _LANE))
        out = _hardshrink_2d(flat.reshape(n // cols, cols), lambd, rows_hint, split_bytes)
        return out.reshape(orig_shape)

    # Pathological fallback (no useful divisor, e.g. 2 * large prime):
    # Pallas on the 128-aligned prefix, plain where() on the <128-element tail.
    n_main = (n // _LANE) * _LANE
    main = _hardshrink_2d(flat[:n_main].reshape(-1, _LANE), lambd, tile_rows, split_bytes)
    tail = flat[n_main:]
    tail = jnp.where((tail >= -lambd) & (tail <= lambd), jnp.zeros_like(tail), tail)
    return jnp.concatenate([main.reshape(-1), tail]).reshape(orig_shape)


class MyHardShrink:
    """JAX/Pallas equivalent of the PyTorch MyHardShrink module (forward only)."""

    def __init__(self, lambd=0.5):
        self.lambd = lambd

    def __call__(self, x):
        return hardshrink(x, self.lambd)


def _ref(x, lambd):
    return jnp.where((x >= -lambd) & (x <= lambd), jnp.zeros_like(x), x)


if __name__ == "__main__":
    key = jax.random.PRNGKey(0)
    mod = MyHardShrink(lambd=0.5)

    # Main check: NCHW-like shape whose flat size is 128-aligned (fast path).
    x = jax.random.normal(key, (2, 4, 16, 16), dtype=jnp.float32)
    y = mod(x)
    jax.block_until_ready(y)
    assert y.shape == x.shape and y.dtype == x.dtype
    assert jnp.array_equal(y, _ref(x, 0.5))

    # Multi-block grid path (grid = 2, aligned rows).
    y2 = hardshrink(x, 0.5, tile_rows=8)
    jax.block_until_ready(y2)
    assert jnp.array_equal(y2, _ref(x, 0.5))

    # Dual-TensorCore split logic (forces grid >= 2 via the split_bytes threshold).
    y2b = hardshrink(x, 0.5, split_bytes=1024)
    jax.block_until_ready(y2b)
    assert jnp.array_equal(y2b, _ref(x, 0.5))

    # bf16 path (sublane packing = 16).
    xb = x.astype(jnp.bfloat16)
    yb = hardshrink(xb, 0.5)
    jax.block_until_ready(yb)
    assert yb.dtype == xb.dtype and jnp.array_equal(yb, _ref(xb, 0.5))

    # Non-128-divisible size: zero-copy ragged 2D view path.
    x3 = jax.random.normal(jax.random.PRNGKey(1), (3, 5, 7, 11), dtype=jnp.float32)
    y3 = hardshrink(x3, 0.5)
    jax.block_until_ready(y3)
    assert y3.shape == x3.shape and y3.dtype == x3.dtype
    assert jnp.array_equal(y3, _ref(x3, 0.5))

    # Tiny (< 128 element) array: single full-extent (1, n) block.
    x5 = jax.random.normal(jax.random.PRNGKey(2), (2, 3, 5), dtype=jnp.float32)
    y5 = hardshrink(x5, 0.5)
    jax.block_until_ready(y5)
    assert jnp.array_equal(y5, _ref(x5, 0.5))

    # Pathological size (2 * prime): aligned-prefix kernel + tail fallback.
    x6 = jax.random.normal(jax.random.PRNGKey(3), (2, 10007), dtype=jnp.float32)
    y6 = hardshrink(x6, 0.5)
    jax.block_until_ready(y6)
    assert jnp.array_equal(y6, _ref(x6, 0.5))

    print("KERNEL_OK")
</pallas_src>

<mosaic_0001>
module attributes {stable_mosaic.version = 11 : i64} {
  func.func @_hardshrink_kernel(%arg0: i32, %arg1: memref<16x128xf32, #tpu.memory_space<vmem>>, %arg2: memref<16x128xf32, #tpu.memory_space<vmem>>) attributes {dimension_semantics = [#tpu.dimension_semantics<parallel>], iteration_bounds = array<i64: 1>, scalar_prefetch = 0 : i64, scratch_operands = 0 : i64, tpu.core_type = #tpu.core_type<tc>, window_params = [{transform_indices = @transform_0, window_bounds = array<i64: 16, 128>}, {transform_indices = @transform_1, window_bounds = array<i64: 16, 128>}]} {
    %c0 = arith.constant 0 : index
    %c0_0 = arith.constant 0 : index
    %0 = vector.load %arg1[%c0, %c0_0] : memref<16x128xf32, #tpu.memory_space<vmem>>, vector<16x128xf32>
    %cst = arith.constant -5.000000e-01 : f32
    %1 = vector.broadcast %cst : f32 to vector<16x128xf32>
    %2 = arith.cmpf oge, %0, %1 : vector<16x128xf32>
    %cst_1 = arith.constant 5.000000e-01 : f32
    %3 = vector.broadcast %cst_1 : f32 to vector<16x128xf32>
    %4 = arith.cmpf ole, %0, %3 : vector<16x128xf32>
    %5 = arith.andi %2, %4 : vector<16x128xi1>
    %cst_2 = arith.constant 0.000000e+00 : f32
    %6 = vector.broadcast %cst_2 : f32 to vector<16x128xf32>
    %7 = arith.select %5, %6, %0 : vector<16x128xi1>, vector<16x128xf32>
    %c0_3 = arith.constant 0 : index
    %c0_4 = arith.constant 0 : index
    %8 = vector.load %arg2[%c0_3, %c0_4] : memref<16x128xf32, #tpu.memory_space<vmem>>, vector<16x128xf32>
    tpu.vector_store %arg2[%c0_3, %c0_4], %7 {strides = array<i32>} : memref<16x128xf32, #tpu.memory_space<vmem>>, vector<16x128xf32>,
    return
  }
  func.func @transform_0(%arg0: i32) -> (i32, i32) {
    %c0_i32 = arith.constant 0 : i32
    %c0_i32_0 = arith.constant 0 : i32
    return %arg0, %c0_i32 : i32, i32
  }
  func.func @transform_1(%arg0: i32) -> (i32, i32) {
    %c0_i32 = arith.constant 0 : i32
    %c0_i32_0 = arith.constant 0 : i32
    return %arg0, %c0_i32 : i32, i32
  }
}

</mosaic_0001>

<bundles_post_ra>
// kernel: tpu_custom_call.1
= control target key start
LH: loop header
LB: loop body
LE: loop exit
PB: predicated region body
PF: predicated region fallthrough
CT: control target
= control target key end

     0   :  { %6 = vsyncpa [#allocation3], 0  ;;  %s132_s0 = inlined_call_operand.hbm [shape: f32[16,128], index: 0, kind: input, shape index: {}]   ;;  %s133_s1 = inlined_call_operand.hbm [shape: f32[16,128], index: 1, kind: output, shape index: {}]  }
   0x1   :  { %7 = vsyncpa [#allocation4], 0  ;;  %s12_s8 = sshll.u32 %s132_s0, 4  ;;  %s112_s9 = smov [#allocation2]   ;;  %s13_s8 = int_to_ptr.hbm [resolvable:$true] %s12_s8 }
   0x2   :  { %s14_s10 = sshll.u32 %s112_s9, 4  ;;  %s113_s11 = smov 128   ;;  %s15_s10 = int_to_ptr.vmem [resolvable:$true] %s14_s10 }
   0x3   :  { %s114_s12 = smov 8  }
   0x4   :  { %20 = dma.hbm_to_vmem [thread:$0]  %s13_s8, 256, %s15_s10, [#allocation3], %s113_s11, %s113_s11, %s114_s12  }
   0x5   :  { %108 = dma.done.wait [#allocation3], 256  }
   0x6   :  { %109 = vsyncadd [#allocation3], 4294967040  ;;  %v25_v0 = vld [vmem:[#allocation2] sm:$0xff]  ;;  %v26_v1 = vld [vmem:[#allocation2 + $0x8] sm:$0xff]  ;;  %s115_s13 = smov [#allocation5]   ;;  %s43_s17 = sshll.u32 %s133_s1, 4  ;;  %s44_s17 = int_to_ptr.hbm [resolvable:$true] %s43_s17 }
   0x7   :  { %s41_s14 = sshll.u32 %s115_s13, 4  ;;  %vm27_vm0 = vcmp.ge.f32.partialorder %v25_v0, -0.5  ;;  %vm29_vm1 = vcmp.le.f32.partialorder %v25_v0, 0.5  ;;  %vm28_vm2 = vcmp.ge.f32.partialorder %v26_v1, -0.5  ;;  %vm30_vm3 = vcmp.le.f32.partialorder %v26_v1, 0.5  ;;  %s42_s14 = int_to_ptr.vmem [resolvable:$true] %s41_s14 }
   0x8   :  { %vm31_vm4 = vmand %vm27_vm0, %vm29_vm1 }
   0x9   :  { %v33_v2 = vsel %vm31_vm4, 0.0, %v25_v0  ;;  %vm32_vm5 = vmand %vm28_vm2, %vm30_vm3 }
   0xa   :  { %35 = vst [vmem:[#allocation5] sm:$0xff] %v33_v2  ;;  %v34_v3 = vsel %vm32_vm5, 0.0, %v26_v1 }
   0xb   :  { %36 = vst [vmem:[#allocation5 + $0x8] sm:$0xff] %v34_v3 }
   0xc   :  { %49 = dma.vmem_to_hbm [thread:$0]  %s42_s14, 256, %s44_s17, [#allocation4], %s113_s11, %s113_s11, %s114_s12  }
   0xd   :  { %110 = dma.done.wait [#allocation4], 256  }
   0xe   :  { %111 = vsyncadd [#allocation4], 4294967040 }
   0xf   :  { %54 = vsyncpa [#allocation3], 1 }
  0x10   :  { %55 = vsyncpa [#allocation4], 1 }

</bundles_post_ra>
